<compile_context>
chip_gen: v7x
topology: tpu7x:2x2x1
jax: 0.10.0
libtpu: 0.0.40
codegen_flags: <defaults>
</compile_context>

<pallas_src>
import functools

import jax
import jax.numpy as jnp
from jax import lax
from jax.experimental import pallas as pl
from jax.experimental.pallas import tpu as pltpu


def _round_up(x, m):
    return ((x + m - 1) // m) * m


def _distmult_kernel(src_ref, dst_ref, typ_ref,   # (1, TE) int32 index blocks (VMEM)
                     zt_ref, relt_ref,            # (H, N_pad) / (H, R_pad), whole-VMEM
                     out_ref):                    # (1, TE) f32 score block
    te = out_ref.shape[1]
    h, n_pad = zt_ref.shape
    r_pad = relt_ref.shape[1]

    src = src_ref[...]                            # (1, TE) int32
    dst = dst_ref[...]
    typ = typ_ref[...]

    # One-hot gather matrices: edges along lanes, node/relation ids along sublanes.
    node_iota = lax.broadcasted_iota(jnp.int32, (n_pad, te), 0)
    rel_iota = lax.broadcasted_iota(jnp.int32, (r_pad, te), 0)
    oh_src = (node_iota == src).astype(zt_ref.dtype)       # (N_pad, TE)
    oh_dst = (node_iota == dst).astype(zt_ref.dtype)       # (N_pad, TE)
    oh_typ = (rel_iota == typ).astype(relt_ref.dtype)      # (R_pad, TE)

    # MXU gathers (native input dtype, f32 accumulation).
    zs = jnp.dot(zt_ref[...], oh_src, preferred_element_type=jnp.float32)    # (H, TE)
    zd = jnp.dot(zt_ref[...], oh_dst, preferred_element_type=jnp.float32)    # (H, TE)
    rr = jnp.dot(relt_ref[...], oh_typ, preferred_element_type=jnp.float32)  # (H, TE)

    prod = zs * rr * zd                                                      # (H, TE) f32

    # Hidden-dim reduction on the MXU; result is already lane-major (1, TE),
    # so the store is a full-lane, unmasked vst with no relayout.
    ones_row = jnp.ones((1, h), dtype=jnp.float32)
    out_ref[...] = jnp.dot(ones_row, prod, preferred_element_type=jnp.float32)


@functools.partial(jax.jit, static_argnames=("edge_tile",))
def distmult_decode(z, rel_emb, edge_index, edge_type, *, edge_tile=None):
    """DistMult scoring: returns [E] float32 scores."""
    num_nodes, hidden = z.shape
    num_rel = rel_emb.shape[0]
    E = edge_index.shape[1]

    # Concrete edge tile (multiple of 128 for lane-dense output); padded tail.
    if edge_tile is None:
        te = min(1024, _round_up(max(E, 1), 128))
    else:
        te = int(edge_tile)
    assert te % 128 == 0, "edge tile must be a multiple of 128"

    e_pad = _round_up(max(E, 1), te)
    num_tiles = e_pad // te
    pad = e_pad - E

    # Padded indices (pad with 0: valid rows, scores sliced away below);
    # laid out as (1, E_pad) rows so they arrive as (1, te) VMEM blocks.
    src = jnp.pad(edge_index[0].astype(jnp.int32), (0, pad))[None, :]
    dst = jnp.pad(edge_index[1].astype(jnp.int32), (0, pad))[None, :]
    typ = jnp.pad(edge_type.astype(jnp.int32), (0, pad))[None, :]

    # (feature, node) / (feature, relation) layout; zero-padded columns are never
    # selected by the one-hot gather (indices < num_nodes / num_rel).
    n_pad = _round_up(num_nodes, 128)
    r_pad = _round_up(num_rel, 128)
    zt = jnp.pad(z.T, ((0, 0), (0, n_pad - num_nodes)))
    relt = jnp.pad(rel_emb.T, ((0, 0), (0, r_pad - num_rel)))

    # VMEM budget: resident tables + double-buffered index/output blocks +
    # rough in-kernel intermediate footprint (one-hots, gathered rows, product).
    table_bytes = zt.size * zt.dtype.itemsize + relt.size * relt.dtype.itemsize
    block_bytes = 2 * (3 * te * 4 + te * 4)
    interm_bytes = (2 * n_pad + r_pad + 4 * hidden) * te * 4
    vmem_limit = int(min(max(table_bytes + block_bytes + interm_bytes + (4 << 20),
                             32 << 20),
                         64 << 20))

    vmem_whole = pl.BlockSpec(memory_space=pltpu.MemorySpace.VMEM)
    idx_spec = pl.BlockSpec((1, te), lambda i: (0, i))

    out = pl.pallas_call(
        _distmult_kernel,
        out_shape=jax.ShapeDtypeStruct((1, e_pad), jnp.float32),
        grid=(num_tiles,),
        in_specs=[idx_spec, idx_spec, idx_spec, vmem_whole, vmem_whole],
        out_specs=pl.BlockSpec((1, te), lambda i: (0, i)),
        compiler_params=pltpu.CompilerParams(
            dimension_semantics=("parallel",),     # v7x: split edge tiles across 2 TCs
            vmem_limit_bytes=vmem_limit,
        ),
    )(src, dst, typ, zt, relt)

    return out[0, :E]


def xavier_uniform(key, shape, dtype=jnp.float32):
    """Matches torch.nn.init.xavier_uniform_ for a 2D weight."""
    fan_out, fan_in = shape[0], shape[1]
    limit = jnp.sqrt(6.0 / (fan_in + fan_out))
    return jax.random.uniform(key, shape, dtype=dtype, minval=-limit, maxval=limit)


if __name__ == "__main__":
    # Small, deterministic example shapes (matches the module's usage).
    num_relations = 35    # len(reltypes) in encodeEdgeTypes
    hidden = 32
    num_nodes = 16
    num_edges = 8

    key = jax.random.PRNGKey(0)
    k_rel, k_z, k_src, k_dst, k_type = jax.random.split(key, 5)

    # Module parameter: rel_emb [num_relations, hidden], xavier-uniform init.
    rel_emb = xavier_uniform(k_rel, (num_relations, hidden))

    # Forward inputs.
    z = jax.random.normal(k_z, (num_nodes, hidden), dtype=jnp.float32)
    edge_index = jnp.stack([
        jax.random.randint(k_src, (num_edges,), 0, num_nodes),
        jax.random.randint(k_dst, (num_edges,), 0, num_nodes),
    ], axis=0)                                          # [2, E] int32
    edge_type = jax.random.randint(k_type, (num_edges,), 0, num_relations)

    out = distmult_decode(z, rel_emb, edge_index, edge_type)
    out = jax.block_until_ready(out)

    # Reference check in plain JAX (same math, no Pallas).  Tolerance allows for
    # the MXU possibly running f32 matmuls as reduced-precision bf16 passes on
    # some generations; algorithmic errors would be O(1), far above this bound.
    ref = jnp.sum(z[edge_index[0]] * rel_emb[edge_type] * z[edge_index[1]], axis=1)
    assert out.shape == (num_edges,)
    assert jnp.allclose(out, ref, atol=2e-2, rtol=2e-2), (out, ref)

    print("KERNEL_OK")
</pallas_src>

<mosaic_0001>
module attributes {stable_mosaic.version = 11 : i64} {
  func.func @_distmult_kernel(%arg0: i32, %arg1: memref<1x128xi32, #tpu.memory_space<vmem>>, %arg2: memref<1x128xi32, #tpu.memory_space<vmem>>, %arg3: memref<1x128xi32, #tpu.memory_space<vmem>>, %arg4: memref<32x128xf32, #tpu.memory_space<vmem>>, %arg5: memref<32x128xf32, #tpu.memory_space<vmem>>, %arg6: memref<1x128xf32, #tpu.memory_space<vmem>>) attributes {dimension_semantics = [#tpu.dimension_semantics<parallel>], iteration_bounds = array<i64: 1>, scalar_prefetch = 0 : i64, scratch_operands = 0 : i64, tpu.core_type = #tpu.core_type<tc>, window_params = [{transform_indices = @transform_0, window_bounds = array<i64: 1, 128>}, {transform_indices = @transform_1, window_bounds = array<i64: 1, 128>}, {transform_indices = @transform_2, window_bounds = array<i64: 1, 128>}, {pipeline_mode = #tpu.pipeline_mode<synchronous>, transform_indices = @transform_3, window_bounds = array<i64: 32, 128>}, {pipeline_mode = #tpu.pipeline_mode<synchronous>, transform_indices = @transform_4, window_bounds = array<i64: 32, 128>}, {transform_indices = @transform_5, window_bounds = array<i64: 1, 128>}]} {
    %c0 = arith.constant 0 : index
    %c0_0 = arith.constant 0 : index
    %0 = vector.load %arg1[%c0, %c0_0] : memref<1x128xi32, #tpu.memory_space<vmem>>, vector<1x128xi32>
    %c0_1 = arith.constant 0 : index
    %c0_2 = arith.constant 0 : index
    %1 = vector.load %arg2[%c0_1, %c0_2] : memref<1x128xi32, #tpu.memory_space<vmem>>, vector<1x128xi32>
    %c0_3 = arith.constant 0 : index
    %c0_4 = arith.constant 0 : index
    %2 = vector.load %arg3[%c0_3, %c0_4] : memref<1x128xi32, #tpu.memory_space<vmem>>, vector<1x128xi32>
    %3 = tpu.iota {dimensions = array<i32: 0>} : vector<128x128xi32>
    %4 = tpu.iota {dimensions = array<i32: 0>} : vector<128x128xi32>
    %5 = vector.broadcast %0 : vector<1x128xi32> to vector<128x128xi32>
    %6 = arith.cmpi eq, %3, %5 : vector<128x128xi32>
    %7 = arith.extui %6 : vector<128x128xi1> to vector<128x128xi32>
    %8 = arith.sitofp %7 : vector<128x128xi32> to vector<128x128xf32>
    %9 = vector.broadcast %1 : vector<1x128xi32> to vector<128x128xi32>
    %10 = arith.cmpi eq, %3, %9 : vector<128x128xi32>
    %11 = arith.extui %10 : vector<128x128xi1> to vector<128x128xi32>
    %12 = arith.sitofp %11 : vector<128x128xi32> to vector<128x128xf32>
    %13 = vector.broadcast %2 : vector<1x128xi32> to vector<128x128xi32>
    %14 = arith.cmpi eq, %4, %13 : vector<128x128xi32>
    %15 = arith.extui %14 : vector<128x128xi1> to vector<128x128xi32>
    %16 = arith.sitofp %15 : vector<128x128xi32> to vector<128x128xf32>
    %c0_5 = arith.constant 0 : index
    %c0_6 = arith.constant 0 : index
    %17 = vector.load %arg4[%c0_5, %c0_6] : memref<32x128xf32, #tpu.memory_space<vmem>>, vector<32x128xf32>
    %cst = arith.constant dense<0.000000e+00> : vector<32x128xf32>
    %18 = tpu.matmul %17, %8, %cst {dimension_numbers = #tpu.dot_dimension_numbers<[1], [0], [0], [1], [0, 0, 1, 1], [], []>} : vector<32x128xf32>, vector<128x128xf32>, vector<32x128xf32> -> vector<32x128xf32>
    %c0_7 = arith.constant 0 : index
    %c0_8 = arith.constant 0 : index
    %19 = vector.load %arg4[%c0_7, %c0_8] : memref<32x128xf32, #tpu.memory_space<vmem>>, vector<32x128xf32>
    %cst_9 = arith.constant dense<0.000000e+00> : vector<32x128xf32>
    %20 = tpu.matmul %19, %12, %cst_9 {dimension_numbers = #tpu.dot_dimension_numbers<[1], [0], [0], [1], [0, 0, 1, 1], [], []>} : vector<32x128xf32>, vector<128x128xf32>, vector<32x128xf32> -> vector<32x128xf32>
    %c0_10 = arith.constant 0 : index
    %c0_11 = arith.constant 0 : index
    %21 = vector.load %arg5[%c0_10, %c0_11] : memref<32x128xf32, #tpu.memory_space<vmem>>, vector<32x128xf32>
    %cst_12 = arith.constant dense<0.000000e+00> : vector<32x128xf32>
    %22 = tpu.matmul %21, %16, %cst_12 {dimension_numbers = #tpu.dot_dimension_numbers<[1], [0], [0], [1], [0, 0, 1, 1], [], []>} : vector<32x128xf32>, vector<128x128xf32>, vector<32x128xf32> -> vector<32x128xf32>
    %23 = arith.mulf %18, %22 : vector<32x128xf32>
    %24 = arith.mulf %23, %20 : vector<32x128xf32>
    %cst_13 = arith.constant 1.000000e+00 : f32
    %25 = vector.broadcast %cst_13 : f32 to vector<1x32xf32>
    %cst_14 = arith.constant dense<0.000000e+00> : vector<1x128xf32>
    %26 = tpu.matmul %25, %24, %cst_14 {dimension_numbers = #tpu.dot_dimension_numbers<[1], [0], [0], [1], [0, 0, 1, 1], [], []>} : vector<1x32xf32>, vector<32x128xf32>, vector<1x128xf32> -> vector<1x128xf32>
    %c0_15 = arith.constant 0 : index
    %c0_16 = arith.constant 0 : index
    %27 = vector.load %arg6[%c0_15, %c0_16] : memref<1x128xf32, #tpu.memory_space<vmem>>, vector<1x128xf32>
    tpu.vector_store %arg6[%c0_15, %c0_16], %26 {strides = array<i32>} : memref<1x128xf32, #tpu.memory_space<vmem>>, vector<1x128xf32>,
    return
  }
  func.func @transform_0(%arg0: i32) -> (i32, i32) {
    %c0_i32 = arith.constant 0 : i32
    %c0_i32_0 = arith.constant 0 : i32
    return %c0_i32, %arg0 : i32, i32
  }
  func.func @transform_1(%arg0: i32) -> (i32, i32) {
    %c0_i32 = arith.constant 0 : i32
    %c0_i32_0 = arith.constant 0 : i32
    return %c0_i32, %arg0 : i32, i32
  }
  func.func @transform_2(%arg0: i32) -> (i32, i32) {
    %c0_i32 = arith.constant 0 : i32
    %c0_i32_0 = arith.constant 0 : i32
    return %c0_i32, %arg0 : i32, i32
  }
  func.func @transform_3(%arg0: i32) -> (i32, i32) {
    %c0_i32 = arith.constant 0 : i32
    %c0_i32_0 = arith.constant 0 : i32
    %c0_i32_1 = arith.constant 0 : i32
    return %c0_i32, %c0_i32_0 : i32, i32
  }
  func.func @transform_4(%arg0: i32) -> (i32, i32) {
    %c0_i32 = arith.constant 0 : i32
    %c0_i32_0 = arith.constant 0 : i32
    %c0_i32_1 = arith.constant 0 : i32
    return %c0_i32, %c0_i32_0 : i32, i32
  }
  func.func @transform_5(%arg0: i32) -> (i32, i32) {
    %c0_i32 = arith.constant 0 : i32
    %c0_i32_0 = arith.constant 0 : i32
    return %c0_i32, %arg0 : i32, i32
  }
}

</mosaic_0001>

<bundles_post_ra>
// kernel: distmult_decode.1
= control target key start
LH: loop header
LB: loop body
LE: loop exit
PB: predicated region body
PF: predicated region fallthrough
CT: control target
= control target key end

     0   :  { %v23_v0 = vlaneseq  ;;  %v943_v9 = vmov 1.0|1.0   ;;  %v944_v42 = vmov 0.0|0.0   ;;  %v946_v43 = vmov 0.0   ;;  %s1315_s0 = inlined_call_operand.vmem [shape: s32[1,128], index: 0, kind: input, shape index: {}]   ;;  %s1316_s3 = inlined_call_operand.vmem [shape: f32[32,128], index: 3, kind: input, shape index: {}]   ;;  %s1317_s1 = inlined_call_operand.vmem [shape: s32[1,128], index: 1, kind: input, shape index: {}]   ;;  %s1318_s2 = inlined_call_operand.vmem [shape: s32[1,128], index: 2, kind: input, shape index: {}]   ;;  %s1319_s4 = inlined_call_operand.vmem [shape: f32[32,128], index: 4, kind: input, shape index: {}]   ;;  %s1320_s5 = inlined_call_operand.vmem [shape: f32[1,128], index: 5, kind: output, shape index: {}]  }
   0x1   :  { %v981_v1 = vld [vmem:[%s1315_s0] ss:$0 sm:$0xff]  ;;  %v197_v34 = vld [vmem:[%s1316_s3 + $0x8] sm:$0xff]  ;;  %v198_v35 = vld [vmem:[%s1316_s3 + $0x10] sm:$0xff] }
   0x2   :  { %v196_v2 = vld [vmem:[%s1316_s3] sm:$0xff]  ;;  %v986_v3 = vshrl.u32 %v23_v0, 7  ;;  %v199_v37 = vld [vmem:[%s1316_s3 + $0x18] sm:$0xff]  ;;  %v371_v39 = vld [vmem:[%s1319_s4 + $0x8] sm:$0xff] }
   0x3   :  { %743 = vmatprep.mubr.f32.mxu0 %v196_v2  ;;  %781 = vmatprep.mubr.f32.mxu1 %v196_v2  ;;  %v1027_v12 = vld [vmem:[%s1317_s1] ss:$0 sm:$0xff]  ;;  %v372_v40 = vld [vmem:[%s1319_s4 + $0x10] sm:$0xff]  ;;  %v373_v41 = vld [vmem:[%s1319_s4 + $0x18] sm:$0xff]  ;;  %v947_v2 = vmov 1.0  }
   0x4   :  { %v989_v4 = vadd.s32 8, %v986_v3  ;;  %vm44_vm0 = vcmp.eq.s32.totalorder %v986_v3, %v981_v1  ;;  %v994_v5 = vadd.s32 16, %v986_v3  ;;  %v997_v6 = vadd.s32 24, %v986_v3  ;;  %v1166_v29 = vld [vmem:[%s1318_s2] ss:$0 sm:$0xff] }
   0x5   :  { %v1000_v7 = vadd.s32 32, %v986_v3  ;;  %v1003_v8 = vadd.s32 40, %v986_v3  ;;  %v1017_v10 = vadd.s32 48, %v986_v3  ;;  %v1020_v11 = vadd.s32 56, %v986_v3  ;;  %v370_v38 = vld [vmem:[%s1319_s4] sm:$0xff] }
   0x6   :  { %vm45_vm1 = vcmp.eq.s32.totalorder %v989_v4, %v981_v1  ;;  %vm46_vm2 = vcmp.eq.s32.totalorder %v994_v5, %v981_v1  ;;  %vm47_vm3 = vcmp.eq.s32.totalorder %v997_v6, %v981_v1  ;;  %v1038_v14 = vadd.s32 64, %v986_v3 }
   0x7   :  { %vm836_vm4 = vmpackc.low %vm45_vm1, %vm44_vm0  ;;  %vm48_vm6 = vcmp.eq.s32.totalorder %v1000_v7, %v981_v1  ;;  %vm49_vm7 = vcmp.eq.s32.totalorder %v1003_v8, %v981_v1  ;;  %vm50_vm9 = vcmp.eq.s32.totalorder %v1017_v10, %v981_v1  ;;  %vm51_vm10 = vcmp.eq.s32.totalorder %v1020_v11, %v981_v1 }
   0x8   :  { %837 = vmatprep.subr.msk.bf16.mxu0 %vm836_vm4, %v943_v9  ;;  %vm840_vm5 = vmpackc.low %vm47_vm3, %vm46_vm2  ;;  %v1041_v15 = vadd.s32 72, %v986_v3  ;;  %vm96_vm11 = vcmp.eq.s32.totalorder %v986_v3, %v1027_v12  ;;  %vm97_vm12 = vcmp.eq.s32.totalorder %v989_v4, %v1027_v12  ;;  %vm98_vm14 = vcmp.eq.s32.totalorder %v994_v5, %v1027_v12 }
   0x9   :  { %839 = vmatpush3.bf16.msk.msra.mxu0 %vm836_vm4, %v943_v9  ;;  %vm1029_vm8 = vmpackc.low %vm49_vm7, %vm48_vm6  ;;  %vm99_vm15 = vcmp.eq.s32.totalorder %v997_v6, %v1027_v12  ;;  %vm52_vm0 = vcmp.eq.s32.totalorder %v1038_v14, %v981_v1  ;;  %v1064_v17 = vadd.s32 80, %v986_v3  ;;  %v1067_v18 = vadd.s32 88, %v986_v3 }
   0xa   :  { %841 = vmatprep.subr.msk.bf16.mxu0 %vm840_vm5, %v943_v9  ;;  %vm1051_vm13 = vmpackc.low %vm51_vm10, %vm50_vm9  ;;  %vm53_vm1 = vcmp.eq.s32.totalorder %v1041_v15, %v981_v1  ;;  %vm100_vm3 = vcmp.eq.s32.totalorder %v1000_v7, %v1027_v12  ;;  %vm101_vm4 = vcmp.eq.s32.totalorder %v1003_v8, %v1027_v12  ;;  %v1091_v20 = vadd.s32 96, %v986_v3 }
   0xb   :  { %vm868_vm2 = vmpackc.low %vm97_vm12, %vm96_vm11  ;;  %vm54_vm7 = vcmp.eq.s32.totalorder %v1064_v17, %v981_v1  ;;  %v1094_v21 = vadd.s32 104, %v986_v3  ;;  %vm102_vm10 = vcmp.eq.s32.totalorder %v1017_v10, %v1027_v12  ;;  %vm103_vm11 = vcmp.eq.s32.totalorder %v1020_v11, %v1027_v12 }
   0xc   :  { %869 = vmatprep.subr.msk.bf16.mxu1 %vm868_vm2, %v943_v9  ;;  %vm1081_vm6 = vmpackc.low %vm53_vm1, %vm52_vm0  ;;  %v1123_v24 = vadd.s32 112, %v986_v3  ;;  %v1126_v25 = vadd.s32 120, %v986_v3  ;;  %vm104_vm0 = vcmp.eq.s32.totalorder %v1038_v14, %v1027_v12  ;;  %vm105_vm1 = vcmp.eq.s32.totalorder %v1041_v15, %v1027_v12 }
   0xd   :  { %843 = vmatpush3.bf16.msk.msra.mxu0 %vm840_vm5, %v943_v9  ;;  %871 = vmatpush3.bf16.msk.msra.mxu1 %vm868_vm2, %v943_v9  ;;  %vm872_vm5 = vmpackc.low %vm99_vm15, %vm98_vm14  ;;  %vm57_vm14 = vcmp.eq.s32.totalorder %v1094_v21, %v981_v1 }
   0xe   :  { %845 = vmatprep.subr.msk.bf16.mxu0 %vm1029_vm8, %v943_v9  ;;  %873 = vmatprep.subr.msk.bf16.mxu1 %vm872_vm5, %v943_v9  ;;  %vm1096_vm9 = vmpackc.low %vm101_vm4, %vm100_vm3  ;;  %vm58_vm3 = vcmp.eq.s32.totalorder %v1123_v24, %v981_v1  ;;  %vm59_vm4 = vcmp.eq.s32.totalorder %v1126_v25, %v981_v1 }
   0xf   :  { %vm1128_vm15 = vmpackc.low %vm103_vm11, %vm102_vm10  ;;  %vm149_vm10 = vcmp.eq.s32.totalorder %v989_v4, %v1166_v29 }
  0x11   :  { %847 = vmatpush3.bf16.msk.msra.mxu0 %vm1029_vm8, %v943_v9  ;;  %vm55_vm8 = vcmp.eq.s32.totalorder %v1067_v18, %v981_v1  ;;  %875 = vmatpush3.bf16.msk.msra.mxu1 %vm872_vm5, %v943_v9  ;;  %vm1156_vm5 = vmpackc.low %vm105_vm1, %vm104_vm0  ;;  %vm151_vm0 = vcmp.eq.s32.totalorder %v997_v6, %v1166_v29 }
  0x12   :  { %849 = vmatprep.subr.msk.bf16.mxu0 %vm1051_vm13, %v943_v9  ;;  %vm1111_vm12 = vmpackc.low %vm55_vm8, %vm54_vm7  ;;  %877 = vmatprep.subr.msk.bf16.mxu1 %vm1096_vm9, %v943_v9  ;;  %vm107_vm7 = vcmp.eq.s32.totalorder %v1067_v18, %v1027_v12 }
  0x13   :  { %vm1178_vm8 = vmpackc.low %vm59_vm4, %vm58_vm3  ;;  %vm111_vm3 = vcmp.eq.s32.totalorder %v1126_v25, %v1027_v12 }
  0x15   :  { %851 = vmatpush3.bf16.msk.msra.mxu0 %vm1051_vm13, %v943_v9  ;;  %vm56_vm13 = vcmp.eq.s32.totalorder %v1091_v20, %v981_v1  ;;  %879 = vmatpush3.bf16.msk.msra.mxu1 %vm1096_vm9, %v943_v9  ;;  %vm148_vm9 = vcmp.eq.s32.totalorder %v986_v3, %v1166_v29 }
  0x16   :  { %853 = vmatprep.subr.msk.bf16.mxu0 %vm1081_vm6, %v943_v9  ;;  %vm1145_vm2 = vmpackc.low %vm57_vm14, %vm56_vm13  ;;  %881 = vmatprep.subr.msk.bf16.mxu1 %vm1128_vm15, %v943_v9  ;;  %vm109_vm13 = vcmp.eq.s32.totalorder %v1094_v21, %v1027_v12 }
  0x17   :  { %vm1206_vm14 = vmpackc.low %vm149_vm10, %vm148_vm9  ;;  %vm154_vm9 = vcmp.eq.s32.totalorder %v1017_v10, %v1166_v29  ;;  %vm155_vm10 = vcmp.eq.s32.totalorder %v1020_v11, %v1166_v29 }
  0x19   :  { %855 = vmatpush3.bf16.msk.msra.mxu0 %vm1081_vm6, %v943_v9  ;;  %vm106_vm6 = vcmp.eq.s32.totalorder %v1064_v17, %v1027_v12  ;;  %883 = vmatpush3.bf16.msk.msra.mxu1 %vm1128_vm15, %v943_v9  ;;  %vm150_vm15 = vcmp.eq.s32.totalorder %v994_v5, %v1166_v29 }
  0x1a   :  { %857 = vmatprep.subr.msk.bf16.mxu0 %vm1111_vm12, %v943_v9  ;;  %885 = vmatprep.subr.msk.bf16.mxu1 %vm1156_vm5, %v943_v9  ;;  %vm1189_vm11 = vmpackc.low %vm107_vm7, %vm106_vm6  ;;  %vm153_vm6 = vcmp.eq.s32.totalorder %v1003_v8, %v1166_v29 }
  0x1b   :  { %vm1240_vm4 = vmpackc.low %vm151_vm0, %vm150_vm15  ;;  %vm158_vm15 = vcmp.eq.s32.totalorder %v1064_v17, %v1166_v29  ;;  %vm159_vm0 = vcmp.eq.s32.totalorder %v1067_v18, %v1166_v29 }
  0x1d   :  { %859 = vmatpush3.bf16.msk.msra.mxu0 %vm1111_vm12, %v943_v9  ;;  %vm108_vm12 = vcmp.eq.s32.totalorder %v1091_v20, %v1027_v12  ;;  %887 = vmatpush3.bf16.msk.msra.mxu1 %vm1156_vm5, %v943_v9  ;;  %vm152_vm5 = vcmp.eq.s32.totalorder %v1000_v7, %v1166_v29 }
  0x1e   :  { %861 = vmatprep.subr.msk.bf16.mxu0 %vm1145_vm2, %v943_v9  ;;  %889 = vmatprep.subr.msk.bf16.mxu1 %vm1189_vm11, %v943_v9  ;;  %vm1217_vm1 = vmpackc.low %vm109_vm13, %vm108_vm12  ;;  %vm156_vm12 = vcmp.eq.s32.totalorder %v1038_v14, %v1166_v29  ;;  %vm157_vm13 = vcmp.eq.s32.totalorder %v1041_v15, %v1166_v29 }
  0x21   :  { %863 = vmatpush3.bf16.msk.msra.mxu0 %vm1145_vm2, %v943_v9  ;;  %vm110_vm2 = vcmp.eq.s32.totalorder %v1123_v24, %v1027_v12  ;;  %891 = vmatpush3.bf16.msk.msra.mxu1 %vm1189_vm11, %v943_v9  ;;  %vm912_vm11 = vmpackc.low %vm155_vm10, %vm154_vm9  ;;  %vm467_vm9 = vcmask 261120  }
  0x22   :  { %865 = vmatprep.subr.msk.bf16.mxu0 %vm1178_vm8, %v943_v9  ;;  %893 = vmatprep.subr.msk.bf16.mxu1 %vm1217_vm1, %v943_v9  ;;  %vm896_vm7 = vmpackc.low %vm111_vm3, %vm110_vm2  ;;  %vm160_vm2 = vcmp.eq.s32.totalorder %v1091_v20, %v1166_v29  ;;  %vm161_vm3 = vcmp.eq.s32.totalorder %v1094_v21, %v1166_v29 }
  0x25   :  { %867 = vmatpush3.bf16.msk.msra.mxu0 %vm1178_vm8, %v943_v9  ;;  %895 = vmatpush3.bf16.msk.msra.mxu1 %vm1217_vm1, %v943_v9  ;;  %vm908_vm8 = vmpackc.low %vm153_vm6, %vm152_vm5  ;;  %vm162_vm5 = vcmp.eq.s32.totalorder %v1123_v24, %v1166_v29  ;;  %vm163_vm6 = vcmp.eq.s32.totalorder %v1126_v25, %v1166_v29 }
  0x26   :  { %901 = vmatprep.subr.msk.bf16.mxu0 %vm1206_vm14, %v943_v9  ;;  %897 = vmatprep.subr.msk.bf16.mxu1 %vm896_vm7, %v943_v9  ;;  %vm920_vm1 = vmpackc.low %vm159_vm0, %vm158_vm15 }
  0x28   :  { %744 = vmatmul.mubr.f32.vlgmr.msra.gmra.mrb[0].mxu0 %v197_v34 }
  0x29   :  { %903 = vmatpush3.bf16.msk.msra.mxu0 %vm1206_vm14, %v943_v9  ;;  %746 = vmatprep.mubr.f32.mxu0 %v198_v35  ;;  %vm916_vm14 = vmpackc.low %vm157_vm13, %vm156_vm12 }
  0x2a   :  { %905 = vmatprep.subr.msk.bf16.mxu0 %vm1240_vm4, %v943_v9  ;;  %899 = vmatpush3.bf16.msk.msra.mxu1 %vm896_vm7, %v943_v9  ;;  %vm928_vm7 = vmpackc.low %vm163_vm6, %vm162_vm5 }
  0x2b   :  { %932 = vmatprep.subr.bf16.mxu1 %v944_v42 }
  0x2c   :  { %747 = vmatmul.mubr.f32.gmra.mrb[2].mxu0 %v199_v37 }
  0x2d   :  { %907 = vmatpush3.bf16.msk.msra.mxu0 %vm1240_vm4, %v943_v9  ;;  %819 = vmatprep.mubr.f32.mxu0 %v370_v38  ;;  %vm924_vm4 = vmpackc.low %vm161_vm3, %vm160_vm2 }
  0x2e   :  { %909 = vmatprep.subr.msk.bf16.mxu0 %vm908_vm8, %v943_v9  ;;  %782 = vmatmul.mubr.f32.vlgmr.msra.gmra.mrb[0].mxu1 %v197_v34 }
  0x2f   :  { %784 = vmatprep.mubr.f32.mxu1 %v198_v35 }
  0x31   :  { %911 = vmatpush3.bf16.msk.msra.mxu0 %vm908_vm8, %v943_v9  ;;  %vm945_vm8 = vmmov 0  }
  0x32   :  { %913 = vmatprep.subr.msk.bf16.mxu0 %vm912_vm11, %v943_v9  ;;  %785 = vmatmul.mubr.f32.gmra.mrb[2].mxu1 %v199_v37 }
  0x33   :  { %833 = vmatprep.mubr.msk.f32.mxu1 %vm945_vm8, %v946_v43 }
  0x35   :  { %915 = vmatpush3.bf16.msk.msra.mxu0 %vm912_vm11, %v943_v9 }
  0x36   :  { %917 = vmatprep.subr.msk.bf16.mxu0 %vm916_vm14, %v943_v9 }
  0x39   :  { %919 = vmatpush3.bf16.msk.msra.mxu0 %vm916_vm14, %v943_v9 }
  0x3a   :  { %921 = vmatprep.subr.msk.bf16.mxu0 %vm920_vm1, %v943_v9 }
  0x3d   :  { %923 = vmatpush3.bf16.msk.msra.mxu0 %vm920_vm1, %v943_v9 }
  0x3e   :  { %925 = vmatprep.subr.msk.bf16.mxu0 %vm924_vm4, %v943_v9 }
  0x41   :  { %927 = vmatpush3.bf16.msk.msra.mxu0 %vm924_vm4, %v943_v9 }
  0x42   :  { %929 = vmatprep.subr.msk.bf16.mxu0 %vm928_vm7, %v943_v9 }
  0x45   :  { %931 = vmatpush3.bf16.msk.msra.mxu0 %vm928_vm7, %v943_v9 }
  0x48   :  { %820 = vmatmul.mubr.f32.vlgmr.msra.gmra.mrb[4].mxu0 %v371_v39 }
  0x49   :  { %822 = vmatprep.mubr.f32.mxu0 %v372_v40 }
  0x4c   :  { %823 = vmatmul.mubr.f32.gmra.mrb[6].mxu0 %v373_v41 }
  0xfb   :  { %v745_v44 = vpop.f32.mrb[0].mxu0 }
  0xfc   :  { %v266_v45 = vpop.f32.mrb[1].mxu0 }
  0xff   :  { %v748_v46 = vpop.f32.mrb[2].mxu0 }
 0x100   :  { %v276_v47 = vpop.f32.mrb[3].mxu0 }
 0x101   :  { %v783_v48 = vpop.f32.mrb[0].mxu1 }
 0x102   :  { %v351_v49 = vpop.f32.mrb[1].mxu1 }
 0x105   :  { %v786_v50 = vpop.f32.mrb[2].mxu1 }
 0x106   :  { %v361_v51 = vpop.f32.mrb[3].mxu1 }
 0x11b   :  { %v821_v52 = vpop.f32.mrb[4].mxu0 }
 0x11c   :  { %v460_v53 = vmul.f32 %v821_v52, %v745_v44  ;;  %v440_v54 = vpop.f32.mrb[5].mxu0 }
 0x11d   :  { %v459_v55 = vmul.f32 %v440_v54, %v266_v45 }
 0x11e   :  { %v464_v56 = vmul.f32 %v783_v48, %v460_v53 }
 0x11f   :  { %v463_v57 = vmul.f32 %v459_v55, %v351_v49  ;;  %v824_v58 = vpop.f32.mrb[6].mxu0 }
 0x120   :  { %v462_v59 = vmul.f32 %v824_v58, %v748_v46  ;;  %v450_v60 = vpop.f32.mrb[7].mxu0 }
 0x121   :  { %v933_v61 = vpack.c.bf16 %v464_v56, %v463_v57  ;;  %v461_v62 = vmul.f32 %v450_v60, %v276_v47 }
 0x122   :  { %v466_v63 = vmul.f32 %v786_v50, %v462_v59 }
 0x123   :  { %v465_v0 = vmul.f32 %v461_v62, %v361_v51  ;;  %934 = vmatpush3.bf16.msra.mxu1 %v933_v61 }
 0x124   :  { %935 = vmatprep.subr.bf16.mxu1 %v944_v42 }
 0x125   :  { %v936_v1 = vpack.c.bf16 %v466_v63, %v465_v0 }
 0x127   :  { %937 = vmatpush3.bf16.msra.mxu1 %v936_v1 }
 0x12a   :  { %834 = vmatmul.mubr.msk.f32.vlgmr.msra.gmra.mrb[4].mxu1 %vm467_vm9, %v947_v2 }
 0x1fd   :  { %v537_v3 = vpop.f32.mrb[4].mxu1 }
 0x1fe   :  { %541 = vst [vmem:[%s1320_s5] sm:$0x1] %v537_v3  ;;  %v835_v4 = vpop.f32.mrb[5].mxu1 }

</bundles_post_ra>
